<compile_context>
chip_gen: v5e
topology: v5e:2x2
jax: 0.10.0
libtpu: 0.0.40
codegen_flags: <defaults>
</compile_context>

<pallas_src>
import math

import jax
import jax.numpy as jnp
from jax import lax
from jax.experimental import pallas as pl
from jax.experimental.pallas import tpu as pltpu


# ---------------------------------------------------------------------------
# Row L2-normalization (+ optional constant scale) for the activations.
# Purely HBM-streaming; x is (B, D), tiny compared to the weight.
# ---------------------------------------------------------------------------
def _make_l2norm_kernel(scale: float):
    def kernel(x_ref, o_ref):
        x = x_ref[...].astype(jnp.float32)
        # F.normalize(x, dim=1): x / max(||x||, 1e-12) == x * rsqrt(max(ss, 1e-24))
        inv = lax.rsqrt(jnp.maximum(jnp.sum(x * x, axis=-1, keepdims=True),
                                    jnp.float32(1e-24)))
        o_ref[...] = (x * (inv * jnp.float32(scale))).astype(o_ref.dtype)
    return kernel


def _l2_normalize_rows(x, *, scale=1.0, tile_rows=512, out_dtype=None):
    R, D = x.shape
    out_dtype = out_dtype or x.dtype
    tr = R if R <= tile_rows else tile_rows   # full dim when small, else mult. of 8/16
    return pl.pallas_call(
        _make_l2norm_kernel(scale),
        out_shape=jax.ShapeDtypeStruct((R, D), out_dtype),
        grid=(pl.cdiv(R, tr),),
        in_specs=[pl.BlockSpec((tr, D), lambda i: (i, 0))],
        out_specs=pl.BlockSpec((tr, D), lambda i: (i, 0)),
        compiler_params=pltpu.CompilerParams(dimension_semantics=("parallel",)),
    )(x)


# ---------------------------------------------------------------------------
# Main kernel: fused weight normalization + cosine matmul.
# Grid = (class tiles [outer, parallel], batch tiles [inner, arbitrary]).
# The raw weight tile is resident across the whole inner batch loop and its
# normalization is computed exactly once per class tile into VMEM scratch.
# ---------------------------------------------------------------------------
def _arcface_matmul_kernel(xs_ref, w_ref, out_ref, wn_ref):
    @pl.when(pl.program_id(1) == 0)
    def _():
        w = w_ref[...].astype(jnp.float32)                       # (TC, D)
        inv = lax.rsqrt(jnp.maximum(jnp.sum(w * w, axis=-1, keepdims=True),
                                    jnp.float32(1e-24)))
        wn_ref[...] = (w * inv).astype(wn_ref.dtype)

    # xs already carries the s scale; xs @ wn^T via last-dim contraction (MXU),
    # f32 accumulation regardless of operand dtype.
    out_ref[...] = lax.dot_general(
        xs_ref[...], wn_ref[...],
        dimension_numbers=(((1,), (1,)), ((), ())),
        preferred_element_type=jnp.float32).astype(out_ref.dtype)


def arc_margin_product(x, weight, label, *, s=30.0, m=0.5, easy_margin=False,
                       tile_b=256, tile_c=512, mxu_dtype=jnp.bfloat16):
    """x: (B, in_features), weight: (out_features, in_features), label: (B,).
    Returns (B, out_features) f32 logits matching the PyTorch module."""
    B, D = x.shape
    C, D2 = weight.shape
    assert D == D2
    label = label.astype(jnp.int32)

    cos_m = math.cos(m)
    sin_m = math.sin(m)
    th = math.cos(math.pi - m)
    mm = math.sin(math.pi - m) * m

    # Tile sizes: full dim when small; otherwise multiples of 8 / 128.
    TB = B if B <= tile_b else tile_b
    TC = C if C <= tile_c else tile_c

    # Normalized + s-scaled activations (tiny pass). Weight norm is fused
    # into the main kernel, so the big operand is only ever read once.
    xs = _l2_normalize_rows(x, scale=s, out_dtype=mxu_dtype)

    out = pl.pallas_call(
        _arcface_matmul_kernel,
        out_shape=jax.ShapeDtypeStruct((B, C), jnp.float32),
        grid=(pl.cdiv(C, TC), pl.cdiv(B, TB)),            # class outer, batch inner
        in_specs=[
            pl.BlockSpec((TB, D), lambda j, i: (i, 0)),   # activations (re-stream, tiny)
            pl.BlockSpec((TC, D), lambda j, i: (j, 0)),   # raw weight (streams once)
        ],
        out_specs=pl.BlockSpec((TB, TC), lambda j, i: (i, j)),
        scratch_shapes=[pltpu.VMEM((TC, D), mxu_dtype)],  # normalized weight tile
        compiler_params=pltpu.CompilerParams(
            dimension_semantics=("parallel", "arbitrary")),
    )(xs, weight)

    # --- label-column margin fix-up (O(B*D), plain JAX by design) -----------
    # Every logit except one per row is exactly s*cosine (emitted above).
    # Recompute the B label-column cosines in f32 and overwrite with s*phi.
    xf = x.astype(jnp.float32)
    xn = xf * lax.rsqrt(jnp.maximum(jnp.sum(xf * xf, axis=1, keepdims=True),
                                    jnp.float32(1e-24)))
    wl = weight[label].astype(jnp.float32)                              # (B, D)
    wl = wl * lax.rsqrt(jnp.maximum(jnp.sum(wl * wl, axis=1, keepdims=True),
                                    jnp.float32(1e-24)))
    cos_lab = jnp.sum(xn * wl, axis=1)                                  # (B,)
    # clamp guards NaN when cos^2 > 1 from rounding (reference would NaN there)
    sine = jnp.sqrt(jnp.maximum(1.0 - cos_lab * cos_lab, 0.0))
    phi = cos_lab * cos_m - sine * sin_m
    if easy_margin:
        phi = jnp.where(cos_lab > 0.0, phi, cos_lab)
    else:
        phi = jnp.where(cos_lab > th, phi, cos_lab - mm)
    out = out.at[jnp.arange(B), label].set(s * phi)
    return out


# ---------------------------------------------------------------------------
# Pure-JAX reference (mirrors the PyTorch module exactly).
# ---------------------------------------------------------------------------
def _reference(x, weight, label, *, s=30.0, m=0.5, easy_margin=False):
    cos_m, sin_m = math.cos(m), math.sin(m)
    th = math.cos(math.pi - m)
    mm = math.sin(math.pi - m) * m
    eps = 1e-12
    xn = x / jnp.maximum(jnp.linalg.norm(x, axis=1, keepdims=True), eps)
    wn = weight / jnp.maximum(jnp.linalg.norm(weight, axis=1, keepdims=True), eps)
    cosine = xn @ wn.T
    sine = jnp.sqrt(1.0 - cosine ** 2)
    phi = cosine * cos_m - sine * sin_m
    if easy_margin:
        phi = jnp.where(cosine > 0, phi, cosine)
    else:
        phi = jnp.where(cosine > th, phi, cosine - mm)
    one_hot = jax.nn.one_hot(label, weight.shape[0], dtype=jnp.float32)
    return (one_hot * phi + (1.0 - one_hot) * cosine) * s


if __name__ == "__main__":
    # Small shapes consistent with the module: batch=8, in_features=32, out_features=128
    B, in_features, out_features = 8, 32, 128

    key = jax.random.PRNGKey(0)
    kx, kw, kl = jax.random.split(key, 3)

    x = jax.random.normal(kx, (B, in_features), dtype=jnp.float32)

    # xavier_uniform_ init for weight (out_features, in_features)
    bound = math.sqrt(6.0 / (in_features + out_features))
    weight = jax.random.uniform(
        kw, (out_features, in_features), dtype=jnp.float32, minval=-bound, maxval=bound
    )

    label = jax.random.randint(kl, (B,), 0, out_features, dtype=jnp.int32)

    ref = _reference(x, weight, label, s=30.0, m=0.5, easy_margin=False)

    # f32 MXU path: matches the PyTorch reference to 1e-4.
    out_f32 = arc_margin_product(x, weight, label, s=30.0, m=0.5,
                                 easy_margin=False, mxu_dtype=jnp.float32)
    out_f32 = jax.block_until_ready(out_f32)
    assert out_f32.shape == (B, out_features)
    assert jnp.allclose(out_f32, ref, atol=1e-4, rtol=1e-4), "f32 mismatch vs reference"

    # Default (bf16 MXU operands, f32 accumulation): production path, looser
    # tolerance purely from bf16 operand rounding (label column is exact f32).
    out_bf16 = jax.block_until_ready(
        arc_margin_product(x, weight, label, s=30.0, m=0.5, easy_margin=False))
    assert out_bf16.shape == (B, out_features)
    assert bool(jnp.all(jnp.isfinite(out_bf16)))
    assert jnp.allclose(out_bf16, ref, atol=0.3, rtol=0.0), "bf16 mismatch vs reference"

    print("KERNEL_OK")
</pallas_src>

<mosaic_0001>
module attributes {stable_mosaic.version = 11 : i64} {
  func.func @kernel(%arg0: i32, %arg1: memref<8x32xf32, #tpu.memory_space<vmem>>, %arg2: memref<8x32xf32, #tpu.memory_space<vmem>>) attributes {dimension_semantics = [#tpu.dimension_semantics<parallel>], iteration_bounds = array<i64: 1>, scalar_prefetch = 0 : i64, scratch_operands = 0 : i64, tpu.core_type = #tpu.core_type<tc>, window_params = [{transform_indices = @transform_0, window_bounds = array<i64: 8, 32>}, {transform_indices = @transform_1, window_bounds = array<i64: 8, 32>}]} {
    %c0 = arith.constant 0 : index
    %c0_0 = arith.constant 0 : index
    %0 = vector.load %arg1[%c0, %c0_0] : memref<8x32xf32, #tpu.memory_space<vmem>>, vector<8x32xf32>
    %1 = arith.mulf %0, %0 : vector<8x32xf32>
    %cst = arith.constant dense<0.000000e+00> : vector<8xf32>
    %2 = vector.multi_reduction <add>, %1, %cst [1] : vector<8x32xf32> to vector<8xf32>
    %3 = vector.shape_cast %2 : vector<8xf32> to vector<8x1xf32>
    %cst_1 = arith.constant 1.000000e-24 : f32
    %4 = vector.broadcast %cst_1 : f32 to vector<8x1xf32>
    %5 = arith.maximumf %3, %4 : vector<8x1xf32>
    %6 = math.rsqrt %5 : vector<8x1xf32>
    %cst_2 = arith.constant 3.000000e+01 : f32
    %7 = vector.broadcast %cst_2 : f32 to vector<8x1xf32>
    %8 = arith.mulf %6, %7 : vector<8x1xf32>
    %9 = vector.broadcast %8 : vector<8x1xf32> to vector<8x32xf32>
    %10 = arith.mulf %0, %9 : vector<8x32xf32>
    %c0_3 = arith.constant 0 : index
    %c0_4 = arith.constant 0 : index
    %11 = vector.load %arg2[%c0_3, %c0_4] : memref<8x32xf32, #tpu.memory_space<vmem>>, vector<8x32xf32>
    tpu.vector_store %arg2[%c0_3, %c0_4], %10 {strides = array<i32>} : memref<8x32xf32, #tpu.memory_space<vmem>>, vector<8x32xf32>,
    return
  }
  func.func @transform_0(%arg0: i32) -> (i32, i32) {
    %c0_i32 = arith.constant 0 : i32
    %c0_i32_0 = arith.constant 0 : i32
    return %arg0, %c0_i32 : i32, i32
  }
  func.func @transform_1(%arg0: i32) -> (i32, i32) {
    %c0_i32 = arith.constant 0 : i32
    %c0_i32_0 = arith.constant 0 : i32
    return %arg0, %c0_i32 : i32, i32
  }
}

</mosaic_0001>

<bundles_post_ra>
// kernel: tpu_custom_call.1
= control target key start
LH: loop header
LB: loop body
LE: loop exit
PB: predicated region body
PF: predicated region fallthrough
CT: control target
= control target key end

     0   :  { %6 = vsyncpa [#allocation3], 0  ;;  %s136_s0 = inlined_call_operand.hbm [shape: f32[8,32], index: 0, kind: input, shape index: {}]   ;;  %s137_s1 = inlined_call_operand.hbm [shape: f32[8,32], index: 1, kind: output, shape index: {}]  }
   0x1   :  { %7 = vsyncpa [#allocation4], 0  ;;  %s13_s8 = sshll.u32 %s136_s0, 4  ;;  %s116_s9 = smov [#allocation2]   ;;  %s14_s8 = int_to_ptr.hbm [resolvable:$true] %s13_s8 }
   0x2   :  { %s15_s10 = sshll.u32 %s116_s9, 4  ;;  %s16_s10 = int_to_ptr.vmem [resolvable:$true] %s15_s10 }
   0x3   :  { %18 = dma.hbm_to_vmem [thread:$0]  %s14_s8, 128, %s16_s10, [#allocation3]  }
   0x4   :  { %112 = dma.done.wait [#allocation3], 128  }
   0x5   :  { %113 = vsyncadd [#allocation3], 4294967168  ;;  %v23_v0 = vld [vmem:[#allocation2] sm:$0xff]  ;;  %vm25_vm0 = vcmask 261120   ;;  %s117_s0 = smov [#allocation5]   ;;  %s50_s14 = sshll.u32 %s137_s1, 4  ;;  %s51_s14 = int_to_ptr.hbm [resolvable:$true] %s50_s14 }
   0x6   :  { %v24_v1 = vmul.f32 %v23_v0, %v23_v0  ;;  %s48_s11 = sshll.u32 %s117_s0, 4  ;;  %s49_s11 = int_to_ptr.vmem [resolvable:$true] %s48_s11 }
   0x8   :  { %v26_v2 = vsel %vm25_vm0, %v24_v1, 0.0 }
   0x9   :  { %27 = vadd.xlane.f32.xlu0 %v26_v2 }
  0x7c   :  { %v28_v3 = vpop.xlane.xlu0 %27 }
  0x7d   :  { %v29_v4 = vmax.f32 %v28_v3, 1e-24 }
  0x7f   :  { %62 = vrsqrt.f32 %v29_v4  ;;  %vm36_vm2 = vweird.f32 %v29_v4 }
  0x85   :  { %v63_v5 = vpop.eup %62 }
  0x86   :  { %v31_v6 = vmul.f32 %v63_v5, %v29_v4  ;;  %vm37_vm1 = vweird.f32 %v63_v5 }
  0x87   :  { %vm38_vm3 = vmor %vm36_vm2, %vm37_vm1 }
  0x88   :  { %v32_v7 = vmul.f32 %v63_v5, %v31_v6 }
  0x8a   :  { %v33_v8 = vmul.f32 0.5, %v32_v7 }
  0x8c   :  { %v34_v9 = vsub.f32 1.5, %v33_v8 }
  0x8e   :  { %v35_v10 = vmul.f32 %v63_v5, %v34_v9 }
  0x90   :  { %v39_v11 = vsel %vm38_vm3, %v63_v5, %v35_v10 }
  0x91   :  { %v40_v12 = vmul.f32 30.0, %v39_v11 }
  0x93   :  { %v41_v13 = vmul.f32 %v40_v12, %v23_v0 }
  0x95   :  { %42 = vst.msk [vmem:[#allocation5] sm:$0xff] %vm25_vm0, %v41_v13 }
  0x96   :  { %53 = dma.vmem_to_hbm [thread:$0]  %s49_s11, 128, %s51_s14, [#allocation4]  }
  0x97   :  { %114 = dma.done.wait [#allocation4], 128  }
  0x98   :  { %115 = vsyncadd [#allocation4], 4294967168 }
  0x99   :  { %58 = vsyncpa [#allocation3], 1 }
  0x9a   :  { %59 = vsyncpa [#allocation4], 1 }

</bundles_post_ra>
